<compile_context>
chip_gen: v5e
topology: v5e:2x2
jax: 0.10.0
libtpu: 0.0.40
codegen_flags: <defaults>
</compile_context>

<pallas_src>
import functools

import jax
import jax.numpy as jnp
from jax import lax
from jax.experimental import pallas as pl
from jax.experimental.pallas import tpu as pltpu

BN_EPS = 1e-5
LANE = 128      # lane width: pad all feature dims to a multiple of this
SUBLANE = 8     # sublane width: pad batch to a multiple of this


def _round_up(n, m):
    return (n + m - 1) // m * m


def _default_vmem_limit_bytes():
    """Generation-conditional scoped-VMEM limit (leave headroom under physical)."""
    try:
        kind = jax.devices()[0].device_kind.lower()
    except Exception:  # pragma: no cover - defensive
        kind = ""
    if "v5" in kind or "v6" in kind:
        return 96 * 1024 * 1024    # 128 MiB physical VMEM on v5e/v6e
    return 48 * 1024 * 1024        # v7x: 64 MiB physical VMEM -> stay well under


def _fused_mlp_kernel(*refs, n_hidden, apply_bn, real_batch):
    """refs = (x, [w, b, gamma, beta] * n_hidden, w_out, b_out, o).

    Per hidden layer:  h = BN(ReLU(h @ W + b))   (BN optional, batch-stats,
    biased variance = PyTorch training-mode semantics), then y = h @ W_out + b_out.
    Weights are bf16; matmuls accumulate in f32 on the MXU. Batch-stat reductions
    are masked to the `real_batch` rows so batch padding is inert.
    """
    x_ref = refs[0]
    o_ref = refs[-1]
    idx = 1

    h = x_ref[...]                      # f32 activations
    batch_pad = h.shape[0]
    need_mask = apply_bn and (real_batch != batch_pad)
    if need_mask:
        row_ids = lax.broadcasted_iota(jnp.int32, (batch_pad, 1), 0)
        row_mask = (row_ids < real_batch).astype(jnp.float32)
    inv_b = 1.0 / float(real_batch)

    for _ in range(n_hidden):
        w_ref, b_ref, g_ref, beta_ref = refs[idx:idx + 4]
        idx += 4
        # Linear: bf16 x bf16 on the MXU, f32 accumulate; ReLU on the VPU.
        h = jnp.dot(h.astype(jnp.bfloat16), w_ref[...],
                    preferred_element_type=jnp.float32)
        h = jnp.maximum(h + b_ref[...], 0.0)
        if apply_bn:
            hm = h * row_mask if need_mask else h
            # Two-pass batch stats (biased variance), masked to real rows.
            mean = jnp.sum(hm, axis=0, keepdims=True) * inv_b
            centered = h - mean
            centered_m = centered * row_mask if need_mask else centered
            var = jnp.sum(centered_m * centered_m, axis=0, keepdims=True) * inv_b
            # Fold BN affine into a per-column scale/shift (rsqrt -> EUP slot).
            scale = g_ref[...] * lax.rsqrt(var + BN_EPS)     # (1, N)
            shift = beta_ref[...] - mean * scale             # (1, N)
            h = h * scale + shift                            # 2 VPU ops / elem

    w_out_ref, b_out_ref = refs[idx], refs[idx + 1]
    y = jnp.dot(h.astype(jnp.bfloat16), w_out_ref[...],
                preferred_element_type=jnp.float32)
    o_ref[...] = (y + b_out_ref[...]).astype(o_ref.dtype)


def fused_forward(x_pad, hidden_params, out_params, *, apply_bn, real_batch):
    """One pallas_call running the whole MLP. All operands live in VMEM."""
    batch_pad = x_pad.shape[0]
    inputs = [x_pad]
    for (w_t, b, gamma, beta) in hidden_params:
        inputs += [w_t, b, gamma, beta]
    w_out, b_out = out_params
    inputs += [w_out, b_out]
    n_out_pad = w_out.shape[1]

    kernel = functools.partial(
        _fused_mlp_kernel,
        n_hidden=len(hidden_params),
        apply_bn=apply_bn,
        real_batch=real_batch,
    )
    vmem_spec = pl.BlockSpec(memory_space=pltpu.MemorySpace.VMEM)
    return pl.pallas_call(
        kernel,
        out_shape=jax.ShapeDtypeStruct((batch_pad, n_out_pad), jnp.float32),
        in_specs=[vmem_spec] * len(inputs),
        out_specs=vmem_spec,
        compiler_params=pltpu.CompilerParams(
            vmem_limit_bytes=_default_vmem_limit_bytes()),
    )(*inputs)


def init_params(key, input_shape, n_layers, neurons):
    """Deterministic params mirroring NNmodel.__init__ / _initialize_weights,
    stored pre-transposed ([in, out]), zero-padded to lane-aligned widths, and
    cast to bfloat16 for the matmul operands.

    Linear weights: kaiming_normal_(nonlinearity='relu') -> std = sqrt(2 / fan_in)
    Linear biases : 0
    BatchNorm1d   : gamma = 1, beta = 0 (forward uses batch statistics,
                    matching training-mode PyTorch)
    """
    dims = [input_shape] + list(neurons)
    pdims = [_round_up(d, LANE) for d in dims]
    keys = jax.random.split(key, n_layers + 1)

    hidden = []
    for i in range(n_layers):
        fan_in, fan_out = dims[i], dims[i + 1]
        std = (2.0 / fan_in) ** 0.5
        # PyTorch weight is (out, in); store transposed + padded (in_pad, out_pad).
        w = jax.random.normal(keys[i], (fan_out, fan_in), jnp.float32) * std
        w_t = jnp.zeros((pdims[i], pdims[i + 1]), jnp.float32)
        w_t = w_t.at[:fan_in, :fan_out].set(w.T).astype(jnp.bfloat16)
        b = jnp.zeros((1, pdims[i + 1]), jnp.float32)
        gamma = jnp.zeros((1, pdims[i + 1]), jnp.float32).at[:, :fan_out].set(1.0)
        beta = jnp.zeros((1, pdims[i + 1]), jnp.float32)
        hidden.append((w_t, b, gamma, beta))

    fan_in = dims[-1]
    std = (2.0 / fan_in) ** 0.5
    w = jax.random.normal(keys[-1], (1, fan_in), jnp.float32) * std
    # Pad the 1-wide output to a full 128-lane slab (only column 0 is real).
    w_out = (jnp.zeros((pdims[-1], LANE), jnp.float32)
             .at[:fan_in, :1].set(w.T).astype(jnp.bfloat16))
    b_out = jnp.zeros((1, LANE), jnp.float32)

    return {"hidden": hidden, "output": (w_out, b_out),
            "dims": dims, "pdims": pdims}


def nnmodel_forward(params, x):
    """Forward pass of NNmodel. BatchNorm is skipped when batch size == 1
    (matching `if isinstance(layer, nn.BatchNorm1d) and x.size(0) == 1: continue`).
    For best throughput, callers should batch/stack requests so M >= 128 rows.
    """
    batch, in_feat = x.shape
    in_pad = params["pdims"][0]
    batch_pad = _round_up(max(batch, 1), SUBLANE)
    if in_pad != in_feat or batch_pad != batch:
        x_pad = jnp.zeros((batch_pad, in_pad), x.dtype).at[:batch, :in_feat].set(x)
    else:
        x_pad = x
    apply_bn = batch != 1  # static shape -> static Python decision
    out_pad = fused_forward(x_pad, params["hidden"], params["output"],
                            apply_bn=apply_bn, real_batch=batch)
    return out_pad[:batch, :1]


def _reference_forward(params, x):
    """Pure-JAX reference of the same math (bf16-rounded operands, f32 math)."""
    dims = params["dims"]
    batch = x.shape[0]
    h = x
    for i, (w_t, b, gamma, beta) in enumerate(params["hidden"]):
        fan_in, fan_out = dims[i], dims[i + 1]
        w = w_t.astype(jnp.float32)[:fan_in, :fan_out]
        hb = h.astype(jnp.bfloat16).astype(jnp.float32)
        h = jnp.maximum(hb @ w + b[:, :fan_out], 0.0)
        if batch != 1:
            mean = jnp.mean(h, axis=0, keepdims=True)
            var = jnp.mean((h - mean) ** 2, axis=0, keepdims=True)
            h = (h - mean) * lax.rsqrt(var + BN_EPS)
            h = h * gamma[:, :fan_out] + beta[:, :fan_out]
    w_out, b_out = params["output"]
    hb = h.astype(jnp.bfloat16).astype(jnp.float32)
    return hb @ w_out.astype(jnp.float32)[:dims[-1], :1] + b_out[:, :1]


if __name__ == "__main__":
    key = jax.random.PRNGKey(0)
    k_param, k_data = jax.random.split(key)

    batch = 8
    input_shape = 32
    n_layers = 2
    neurons = [64, 32]

    params = init_params(k_param, input_shape, n_layers, neurons)
    x = jax.random.normal(k_data, (batch, input_shape), jnp.float32)

    out = nnmodel_forward(params, x)
    jax.block_until_ready(out)
    assert out.shape == (batch, 1), out.shape

    # Numeric sanity check vs a pure-JAX reference using the same bf16 operands
    # (bf16 x bf16 products are exact in f32; only accumulation order differs).
    ref = _reference_forward(params, x)
    assert jnp.allclose(out, ref, atol=2e-2, rtol=2e-2), (out, ref)

    # Also exercise the batch==1 path (BatchNorm skipped, per module semantics).
    out1 = nnmodel_forward(params, x[:1])
    jax.block_until_ready(out1)
    assert out1.shape == (1, 1), out1.shape

    print("KERNEL_OK")
</pallas_src>

<mosaic_0001>
module attributes {stable_mosaic.version = 11 : i64} {
  func.func @_fused_mlp_kernel(%arg0: memref<8x128xf32, #tpu.memory_space<vmem>>, %arg1: memref<128x128xbf16, #tpu.memory_space<vmem>>, %arg2: memref<1x128xf32, #tpu.memory_space<vmem>>, %arg3: memref<1x128xf32, #tpu.memory_space<vmem>>, %arg4: memref<1x128xf32, #tpu.memory_space<vmem>>, %arg5: memref<128x128xbf16, #tpu.memory_space<vmem>>, %arg6: memref<1x128xf32, #tpu.memory_space<vmem>>, %arg7: memref<1x128xf32, #tpu.memory_space<vmem>>, %arg8: memref<1x128xf32, #tpu.memory_space<vmem>>, %arg9: memref<128x128xbf16, #tpu.memory_space<vmem>>, %arg10: memref<1x128xf32, #tpu.memory_space<vmem>>, %arg11: memref<8x128xf32, #tpu.memory_space<vmem>>) attributes {dimension_semantics = [], scalar_prefetch = 0 : i64, scratch_operands = 0 : i64, tpu.core_type = #tpu.core_type<tc>} {
    %c0 = arith.constant 0 : index
    %c0_0 = arith.constant 0 : index
    %0 = vector.load %arg0[%c0, %c0_0] : memref<8x128xf32, #tpu.memory_space<vmem>>, vector<8x128xf32>
    %1 = arith.truncf %0 : vector<8x128xf32> to vector<8x128xbf16>
    %c0_1 = arith.constant 0 : index
    %c0_2 = arith.constant 0 : index
    %2 = vector.load %arg1[%c0_1, %c0_2] : memref<128x128xbf16, #tpu.memory_space<vmem>>, vector<128x128xbf16>
    %cst = arith.constant dense<0.000000e+00> : vector<8x128xf32>
    %3 = tpu.matmul %1, %2, %cst {dimension_numbers = #tpu.dot_dimension_numbers<[1], [0], [0], [1], [0, 0, 1, 1], [], []>} : vector<8x128xbf16>, vector<128x128xbf16>, vector<8x128xf32> -> vector<8x128xf32>
    %c0_3 = arith.constant 0 : index
    %c0_4 = arith.constant 0 : index
    %4 = vector.load %arg2[%c0_3, %c0_4] : memref<1x128xf32, #tpu.memory_space<vmem>>, vector<1x128xf32>
    %5 = vector.broadcast %4 : vector<1x128xf32> to vector<8x128xf32>
    %6 = arith.addf %3, %5 : vector<8x128xf32>
    %cst_5 = arith.constant 0.000000e+00 : f32
    %7 = vector.broadcast %cst_5 : f32 to vector<8x128xf32>
    %8 = arith.maximumf %6, %7 : vector<8x128xf32>
    %cst_6 = arith.constant dense<0.000000e+00> : vector<128xf32>
    %9 = vector.multi_reduction <add>, %8, %cst_6 [0] : vector<8x128xf32> to vector<128xf32>
    %10 = vector.shape_cast %9 : vector<128xf32> to vector<1x128xf32>
    %cst_7 = arith.constant 1.250000e-01 : f32
    %11 = vector.broadcast %cst_7 : f32 to vector<1x128xf32>
    %12 = arith.mulf %10, %11 : vector<1x128xf32>
    %13 = vector.broadcast %12 : vector<1x128xf32> to vector<8x128xf32>
    %14 = arith.subf %8, %13 : vector<8x128xf32>
    %15 = arith.mulf %14, %14 : vector<8x128xf32>
    %cst_8 = arith.constant dense<0.000000e+00> : vector<128xf32>
    %16 = vector.multi_reduction <add>, %15, %cst_8 [0] : vector<8x128xf32> to vector<128xf32>
    %17 = vector.shape_cast %16 : vector<128xf32> to vector<1x128xf32>
    %cst_9 = arith.constant 1.250000e-01 : f32
    %18 = vector.broadcast %cst_9 : f32 to vector<1x128xf32>
    %19 = arith.mulf %17, %18 : vector<1x128xf32>
    %c0_10 = arith.constant 0 : index
    %c0_11 = arith.constant 0 : index
    %20 = vector.load %arg3[%c0_10, %c0_11] : memref<1x128xf32, #tpu.memory_space<vmem>>, vector<1x128xf32>
    %cst_12 = arith.constant 9.99999974E-6 : f32
    %21 = vector.broadcast %cst_12 : f32 to vector<1x128xf32>
    %22 = arith.addf %19, %21 : vector<1x128xf32>
    %23 = math.rsqrt %22 : vector<1x128xf32>
    %24 = arith.mulf %20, %23 : vector<1x128xf32>
    %c0_13 = arith.constant 0 : index
    %c0_14 = arith.constant 0 : index
    %25 = vector.load %arg4[%c0_13, %c0_14] : memref<1x128xf32, #tpu.memory_space<vmem>>, vector<1x128xf32>
    %26 = arith.mulf %12, %24 : vector<1x128xf32>
    %27 = arith.subf %25, %26 : vector<1x128xf32>
    %28 = vector.broadcast %24 : vector<1x128xf32> to vector<8x128xf32>
    %29 = arith.mulf %8, %28 : vector<8x128xf32>
    %30 = vector.broadcast %27 : vector<1x128xf32> to vector<8x128xf32>
    %31 = arith.addf %29, %30 : vector<8x128xf32>
    %32 = arith.truncf %31 : vector<8x128xf32> to vector<8x128xbf16>
    %c0_15 = arith.constant 0 : index
    %c0_16 = arith.constant 0 : index
    %33 = vector.load %arg5[%c0_15, %c0_16] : memref<128x128xbf16, #tpu.memory_space<vmem>>, vector<128x128xbf16>
    %cst_17 = arith.constant dense<0.000000e+00> : vector<8x128xf32>
    %34 = tpu.matmul %32, %33, %cst_17 {dimension_numbers = #tpu.dot_dimension_numbers<[1], [0], [0], [1], [0, 0, 1, 1], [], []>} : vector<8x128xbf16>, vector<128x128xbf16>, vector<8x128xf32> -> vector<8x128xf32>
    %c0_18 = arith.constant 0 : index
    %c0_19 = arith.constant 0 : index
    %35 = vector.load %arg6[%c0_18, %c0_19] : memref<1x128xf32, #tpu.memory_space<vmem>>, vector<1x128xf32>
    %36 = vector.broadcast %35 : vector<1x128xf32> to vector<8x128xf32>
    %37 = arith.addf %34, %36 : vector<8x128xf32>
    %cst_20 = arith.constant 0.000000e+00 : f32
    %38 = vector.broadcast %cst_20 : f32 to vector<8x128xf32>
    %39 = arith.maximumf %37, %38 : vector<8x128xf32>
    %cst_21 = arith.constant dense<0.000000e+00> : vector<128xf32>
    %40 = vector.multi_reduction <add>, %39, %cst_21 [0] : vector<8x128xf32> to vector<128xf32>
    %41 = vector.shape_cast %40 : vector<128xf32> to vector<1x128xf32>
    %cst_22 = arith.constant 1.250000e-01 : f32
    %42 = vector.broadcast %cst_22 : f32 to vector<1x128xf32>
    %43 = arith.mulf %41, %42 : vector<1x128xf32>
    %44 = vector.broadcast %43 : vector<1x128xf32> to vector<8x128xf32>
    %45 = arith.subf %39, %44 : vector<8x128xf32>
    %46 = arith.mulf %45, %45 : vector<8x128xf32>
    %cst_23 = arith.constant dense<0.000000e+00> : vector<128xf32>
    %47 = vector.multi_reduction <add>, %46, %cst_23 [0] : vector<8x128xf32> to vector<128xf32>
    %48 = vector.shape_cast %47 : vector<128xf32> to vector<1x128xf32>
    %cst_24 = arith.constant 1.250000e-01 : f32
    %49 = vector.broadcast %cst_24 : f32 to vector<1x128xf32>
    %50 = arith.mulf %48, %49 : vector<1x128xf32>
    %c0_25 = arith.constant 0 : index
    %c0_26 = arith.constant 0 : index
    %51 = vector.load %arg7[%c0_25, %c0_26] : memref<1x128xf32, #tpu.memory_space<vmem>>, vector<1x128xf32>
    %cst_27 = arith.constant 9.99999974E-6 : f32
    %52 = vector.broadcast %cst_27 : f32 to vector<1x128xf32>
    %53 = arith.addf %50, %52 : vector<1x128xf32>
    %54 = math.rsqrt %53 : vector<1x128xf32>
    %55 = arith.mulf %51, %54 : vector<1x128xf32>
    %c0_28 = arith.constant 0 : index
    %c0_29 = arith.constant 0 : index
    %56 = vector.load %arg8[%c0_28, %c0_29] : memref<1x128xf32, #tpu.memory_space<vmem>>, vector<1x128xf32>
    %57 = arith.mulf %43, %55 : vector<1x128xf32>
    %58 = arith.subf %56, %57 : vector<1x128xf32>
    %59 = vector.broadcast %55 : vector<1x128xf32> to vector<8x128xf32>
    %60 = arith.mulf %39, %59 : vector<8x128xf32>
    %61 = vector.broadcast %58 : vector<1x128xf32> to vector<8x128xf32>
    %62 = arith.addf %60, %61 : vector<8x128xf32>
    %63 = arith.truncf %62 : vector<8x128xf32> to vector<8x128xbf16>
    %c0_30 = arith.constant 0 : index
    %c0_31 = arith.constant 0 : index
    %64 = vector.load %arg9[%c0_30, %c0_31] : memref<128x128xbf16, #tpu.memory_space<vmem>>, vector<128x128xbf16>
    %cst_32 = arith.constant dense<0.000000e+00> : vector<8x128xf32>
    %65 = tpu.matmul %63, %64, %cst_32 {dimension_numbers = #tpu.dot_dimension_numbers<[1], [0], [0], [1], [0, 0, 1, 1], [], []>} : vector<8x128xbf16>, vector<128x128xbf16>, vector<8x128xf32> -> vector<8x128xf32>
    %c0_33 = arith.constant 0 : index
    %c0_34 = arith.constant 0 : index
    %66 = vector.load %arg10[%c0_33, %c0_34] : memref<1x128xf32, #tpu.memory_space<vmem>>, vector<1x128xf32>
    %67 = vector.broadcast %66 : vector<1x128xf32> to vector<8x128xf32>
    %68 = arith.addf %65, %67 : vector<8x128xf32>
    %c0_35 = arith.constant 0 : index
    %c0_36 = arith.constant 0 : index
    %69 = vector.load %arg11[%c0_35, %c0_36] : memref<8x128xf32, #tpu.memory_space<vmem>>, vector<8x128xf32>
    tpu.vector_store %arg11[%c0_35, %c0_36], %68 {strides = array<i32>} : memref<8x128xf32, #tpu.memory_space<vmem>>, vector<8x128xf32>,
    return
  }
}

</mosaic_0001>

<bundles_post_ra>
// kernel: tpu_custom_call.1
= control target key start
LH: loop header
LB: loop body
LE: loop exit
PB: predicated region body
PF: predicated region fallthrough
CT: control target
= control target key end

     0   :  { %16 = vsyncpa [#allocation3], 0  ;;  %s814_s0 = inlined_call_operand.hbm [shape: f32[8,128], index: 0, kind: input, shape index: {}]   ;;  %s815_s1 = inlined_call_operand.hbm [shape: bf16[128,128], index: 1, kind: input, shape index: {}]   ;;  %s816_s2 = inlined_call_operand.vmem [shape: f32[1,128], index: 2, kind: input, shape index: {}]   ;;  %s817_s3 = inlined_call_operand.vmem [shape: f32[1,128], index: 3, kind: input, shape index: {}]   ;;  %s818_s4 = inlined_call_operand.vmem [shape: f32[1,128], index: 4, kind: input, shape index: {}]   ;;  %s819_s5 = inlined_call_operand.hbm [shape: bf16[128,128], index: 5, kind: input, shape index: {}]   ;;  %s820_s6 = inlined_call_operand.vmem [shape: f32[1,128], index: 6, kind: input, shape index: {}]   ;;  %s821_s7 = inlined_call_operand.vmem [shape: f32[1,128], index: 7, kind: input, shape index: {}]   ;;  %s822_s8 = inlined_call_operand.vmem [shape: f32[1,128], index: 8, kind: input, shape index: {}]   ;;  %s823_s9 = inlined_call_operand.hbm [shape: bf16[128,128], index: 9, kind: input, shape index: {}]   ;;  %s824_s10 = inlined_call_operand.vmem [shape: f32[1,128], index: 10, kind: input, shape index: {}]   ;;  %s825_s11 = inlined_call_operand.hbm [shape: f32[8,128], index: 11, kind: output, shape index: {}]  }
   0x1   :  { %17 = vsyncpa [#allocation6], 0 }
   0x2   :  { %18 = vsyncpa [#allocation9], 0  ;;  %s35_s19 = sshll.u32 %s815_s1, 4  ;;  %s36_s19 = int_to_ptr.hbm [resolvable:$true] %s35_s19 }
   0x3   :  { %19 = vsyncpa [#allocation4], 0  ;;  %s711_s20 = smov [#allocation5]   ;;  %s25_s24 = sshll.u32 %s814_s0, 4  ;;  %s26_s24 = int_to_ptr.hbm [resolvable:$true] %s25_s24 }
   0x4   :  { %s37_s21 = sshll.u32 %s711_s20, 4  ;;  %s712_s25 = smov 64   ;;  %s38_s21 = int_to_ptr.vmem [resolvable:$true] %s37_s21 }
   0x5   :  { %s713_s26 = smov 4   ;;  %s714_s27 = smov [#allocation2]  }
   0x6   :  { %43 = dma.hbm_to_vmem [thread:$0]  %s36_s19, 1024, %s38_s21, [#allocation6], %s712_s25, %s712_s25, %s713_s26  }
   0x7   :  { %s27_s28 = sshll.u32 %s714_s27, 4  ;;  %s54_s12 = sshll.u32 %s819_s5, 4  ;;  %s28_s28 = int_to_ptr.vmem [resolvable:$true] %s27_s28  ;;  %s55_s12 = int_to_ptr.hbm [resolvable:$true] %s54_s12 }
   0x8   :  { %30 = dma.hbm_to_vmem [thread:$0]  %s26_s24, 128, %s28_s28, [#allocation3]  }
   0x9   :  { %s73_s14 = sshll.u32 %s823_s9, 4  ;;  %s715_s15 = smov [#allocation7]   ;;  %s74_s14 = int_to_ptr.hbm [resolvable:$true] %s73_s14 }
   0xa   :  { %s56_s16 = sshll.u32 %s715_s15, 4  ;;  %s716_s0 = smov [#allocation8]   ;;  %s57_s16 = int_to_ptr.vmem [resolvable:$true] %s56_s16 }
   0xb   :  { %62 = dma.hbm_to_vmem [thread:$0]  %s55_s12, 1024, %s57_s16, [#allocation6], %s712_s25, %s712_s25, %s713_s26  }
   0xc   :  { %s75_s17 = sshll.u32 %s716_s0, 4  ;;  %s76_s17 = int_to_ptr.vmem [resolvable:$true] %s75_s17 }
   0xd   :  { %81 = dma.hbm_to_vmem [thread:$0]  %s74_s14, 1024, %s76_s17, [#allocation9], %s712_s25, %s712_s25, %s713_s26  }
   0xe   :  { %703 = dma.done.wait [#allocation3], 128  }
   0xf   :  { %704 = vsyncadd [#allocation3], 4294967168 }
  0x10   :  { %705 = dma.done.wait [#allocation6], 2048  }
  0x11   :  { %706 = vsyncadd [#allocation6], 4294965248 }
  0x12   :  { %707 = dma.done.wait [#allocation9], 1024  }
  0x13   :  { %708 = vsyncadd [#allocation9], 4294966272  ;;  %v552_v0 = vld [vmem:[#allocation5 + $0x38] sm:$0xff]  ;;  %v551_v1 = vld [vmem:[#allocation5 + $0x30] sm:$0xff]  ;;  %s437_s29 = sshll.u32 %s825_s11, 4  ;;  %s438_s29 = int_to_ptr.hbm [resolvable:$true] %s437_s29 }
  0x14   :  { %170 = vmatpush.bf16.msra.mxu0 %v552_v0  ;;  %v550_v2 = vld [vmem:[#allocation5 + $0x28] sm:$0xff]  ;;  %v549_v3 = vld [vmem:[#allocation5 + $0x20] sm:$0xff]  ;;  %v548_v4 = vld [vmem:[#allocation5 + $0x18] sm:$0xff] }
  0x15   :  { %v547_v5 = vld [vmem:[#allocation5 + $0x10] sm:$0xff]  ;;  %v546_v6 = vld [vmem:[#allocation5 + $0x8] sm:$0xff]  ;;  %v545_v7 = vld [vmem:[#allocation5] sm:$0xff] }
  0x16   :  { %v100_v8 = vld [vmem:[#allocation2] sm:$0xff]  ;;  %v559_v11 = vld [vmem:[#allocation7 + $0x30] sm:$0xff]  ;;  %v558_v12 = vld [vmem:[#allocation7 + $0x28] sm:$0xff] }
  0x17   :  { %v101_v9 = vpack.c.bf16 %v100_v8, %v100_v8  ;;  %v560_v10 = vld [vmem:[#allocation7 + $0x38] sm:$0xff]  ;;  %v557_v13 = vld [vmem:[#allocation7 + $0x20] sm:$0xff]  ;;  %v555_v15 = vld [vmem:[#allocation7 + $0x10] sm:$0xff] }
  0x18   :  { %171 = vmatpush.bf16.msra.mxu0 %v551_v1  ;;  %293 = vmatpush.bf16.msra.mxu1 %v560_v10  ;;  %v556_v14 = vld [vmem:[#allocation7 + $0x18] sm:$0xff]  ;;  %v554_v17 = vld [vmem:[#allocation7 + $0x8] sm:$0xff]  ;;  %v553_v21 = vld [vmem:[#allocation7] sm:$0xff] }
  0x19   :  { %v576_v16 = vld [vmem:[%s816_s2] ss:$0 sm:$0xff]  ;;  %v567_v58 = vld [vmem:[#allocation8 + $0x30] sm:$0xff]  ;;  %v566_v59 = vld [vmem:[#allocation8 + $0x28] sm:$0xff] }
  0x1a   :  { %v200_v45 = vld [vmem:[%s817_s3] sm:$0x1]  ;;  %v565_v60 = vld [vmem:[#allocation8 + $0x20] sm:$0xff]  ;;  %v563_v62 = vld [vmem:[#allocation8 + $0x10] sm:$0xff] }
  0x1b   :  { %v213_v49 = vld [vmem:[%s818_s4] sm:$0x1]  ;;  %v562_v0 = vld [vmem:[#allocation8 + $0x8] sm:$0xff] }
  0x1c   :  { %172 = vmatpush.bf16.msra.mxu0 %v550_v2  ;;  %294 = vmatpush.bf16.msra.mxu1 %v559_v11  ;;  %v568_v57 = vld [vmem:[#allocation8 + $0x38] sm:$0xff] }
  0x1d   :  { %416 = vmatpush.bf16.msra.mxu2 %v568_v57  ;;  %v564_v61 = vld [vmem:[#allocation8 + $0x18] sm:$0xff] }
  0x1e   :  { %v577_v63 = vld [vmem:[%s820_s6] ss:$0 sm:$0xff] }
  0x20   :  { %173 = vmatpush.bf16.msra.mxu0 %v549_v3  ;;  %295 = vmatpush.bf16.msra.mxu1 %v558_v12 }
  0x21   :  { %417 = vmatpush.bf16.msra.mxu2 %v567_v58 }
  0x24   :  { %174 = vmatpush.bf16.msra.mxu0 %v548_v4  ;;  %296 = vmatpush.bf16.msra.mxu1 %v557_v13  ;;  %v561_v4 = vld [vmem:[#allocation8] sm:$0xff] }
  0x25   :  { %418 = vmatpush.bf16.msra.mxu2 %v566_v59 }
  0x28   :  { %175 = vmatpush.bf16.msra.mxu0 %v547_v5  ;;  %297 = vmatpush.bf16.msra.mxu1 %v556_v14 }
  0x29   :  { %419 = vmatpush.bf16.msra.mxu2 %v565_v60 }
  0x2c   :  { %176 = vmatpush.bf16.msra.mxu0 %v546_v6  ;;  %298 = vmatpush.bf16.msra.mxu1 %v555_v15 }
  0x2d   :  { %420 = vmatpush.bf16.msra.mxu2 %v564_v61 }
  0x30   :  { %177 = vmatpush.bf16.msra.mxu0 %v545_v7  ;;  %299 = vmatpush.bf16.msra.mxu1 %v554_v17 }
  0x31   :  { %421 = vmatpush.bf16.msra.mxu2 %v563_v62 }
  0x33   :  { %178 = vmatmul.bf16.vlgmr.msra.gmra.mxu0 %v101_v9 }
  0x34   :  { %300 = vmatpush.bf16.msra.mxu1 %v553_v21 }
  0x35   :  { %422 = vmatpush.bf16.msra.mxu2 %v562_v0 }
  0x39   :  { %423 = vmatpush.bf16.msra.mxu2 %v561_v4 }
  0xb0   :  { %v179_v18 = vpop.f32.mrf.mxu0 }
  0xb1   :  { %v180_v19 = vadd.f32 %v576_v16, %v179_v18 }
  0xb3   :  { %v183_v20 = vmax.f32 %v180_v19, 0.0 }
  0xb5   :  { %v184_v22 = vrot.slane %v183_v20, 4 }
  0xb7   :  { %v185_v23 = vadd.f32 %v184_v22, %v183_v20 }
  0xb8   :  { %v181_v24 = vpop.f32.mrf.mxu0 }
  0xb9   :  { %v186_v25 = vrot.slane %v185_v23, 2 }
  0xbb   :  { %v187_v26 = vadd.f32 %v186_v25, %v185_v23 }
  0xbd   :  { %v188_v27 = vrot.slane %v187_v26, 1 }
  0xbf   :  { %v189_v28 = vadd.f32 %v188_v27, %v187_v26 }
  0xc1   :  { %v190_v29 = vmul.f32 0.125, %v189_v28  ;;  %v323_v28 = vld [vmem:[%s821_s7] sm:$0x1]  ;;  %s717_s7 = smov [#allocation10]  }
  0xc2   :  { %s435_s26 = sshll.u32 %s717_s7, 4  ;;  %s436_s26 = int_to_ptr.vmem [resolvable:$true] %s435_s26 }
  0xc3   :  { %v191_v30 = vsub.f32 %v183_v20, %v190_v29 }
  0xc5   :  { %v192_v31 = vmul.f32 %v191_v30, %v191_v30 }
  0xc7   :  { %v193_v32 = vrot.slane %v192_v31, 4 }
  0xc9   :  { %v194_v33 = vadd.f32 %v193_v32, %v192_v31  ;;  %v336_v32 = vld [vmem:[%s822_s8] sm:$0x1] }
  0xcb   :  { %v195_v34 = vrot.slane %v194_v33, 2 }
  0xcd   :  { %v196_v35 = vadd.f32 %v195_v34, %v194_v33 }
  0xcf   :  { %v197_v36 = vrot.slane %v196_v35, 1 }
  0xd1   :  { %v198_v37 = vadd.f32 %v197_v36, %v196_v35 }
  0xd3   :  { %v199_v38 = vmul.f32 0.125, %v198_v37 }
  0xd5   :  { %v201_v39 = vadd.f32 1e-05, %v199_v38 }
  0xd7   :  { %579 = vrsqrt.f32 %v201_v39  ;;  %vm208_vm1 = vweird.f32 %v201_v39 }
  0xdd   :  { %v580_v40 = vpop.eup %579 }
  0xde   :  { %v203_v41 = vmul.f32 %v580_v40, %v201_v39  ;;  %vm209_vm0 = vweird.f32 %v580_v40 }
  0xdf   :  { %vm210_vm2 = vmor %vm208_vm1, %vm209_vm0 }
  0xe0   :  { %v204_v42 = vmul.f32 %v580_v40, %v203_v41 }
  0xe2   :  { %v205_v43 = vmul.f32 0.5, %v204_v42 }
  0xe4   :  { %v206_v44 = vsub.f32 1.5, %v205_v43 }
  0xe6   :  { %v207_v46 = vmul.f32 %v580_v40, %v206_v44 }
  0xe8   :  { %v211_v47 = vsel %vm210_vm2, %v580_v40, %v207_v46  ;;  %v578_v40 = vld [vmem:[%s824_s10] ss:$0 sm:$0xff] }
  0xe9   :  { %v212_v48 = vmul.f32 %v211_v47, %v200_v45 }
  0xeb   :  { %v214_v50 = vmul.f32 %v212_v48, %v190_v29  ;;  %v217_v51 = vperm.slane %v212_v48, 0 }
  0xed   :  { %v215_v52 = vsub.f32 %v213_v49, %v214_v50  ;;  %v219_v53 = vmul.f32 %v217_v51, %v183_v20 }
  0xef   :  { %v221_v54 = vperm.slane %v215_v52, 0 }
  0xf1   :  { %v223_v55 = vadd.f32 %v221_v54, %v219_v53 }
  0xf3   :  { %v224_v56 = vpack.c.bf16 %v223_v55, %v223_v55 }
  0xf5   :  { %301 = vmatmul.bf16.vlgmr.msra.gmra.mxu1 %v224_v56 }
 0x172   :  { %v302_v1 = vpop.f32.mrf.mxu1 }
 0x173   :  { %v303_v2 = vadd.f32 %v577_v63, %v302_v1 }
 0x175   :  { %v306_v3 = vmax.f32 %v303_v2, 0.0 }
 0x177   :  { %v307_v5 = vrot.slane %v306_v3, 4 }
 0x179   :  { %v308_v6 = vadd.f32 %v307_v5, %v306_v3 }
 0x17a   :  { %v304_v7 = vpop.f32.mrf.mxu1 }
 0x17b   :  { %v309_v8 = vrot.slane %v308_v6, 2 }
 0x17d   :  { %v310_v9 = vadd.f32 %v309_v8, %v308_v6 }
 0x17f   :  { %v311_v10 = vrot.slane %v310_v9, 1 }
 0x181   :  { %v312_v11 = vadd.f32 %v311_v10, %v310_v9 }
 0x183   :  { %v313_v12 = vmul.f32 0.125, %v312_v11 }
 0x185   :  { %v314_v13 = vsub.f32 %v306_v3, %v313_v12 }
 0x187   :  { %v315_v14 = vmul.f32 %v314_v13, %v314_v13 }
 0x189   :  { %v316_v15 = vrot.slane %v315_v14, 4 }
 0x18b   :  { %v317_v16 = vadd.f32 %v316_v15, %v315_v14 }
 0x18d   :  { %v318_v17 = vrot.slane %v317_v16, 2 }
 0x18f   :  { %v319_v18 = vadd.f32 %v318_v17, %v317_v16 }
 0x191   :  { %v320_v19 = vrot.slane %v319_v18, 1 }
 0x193   :  { %v321_v20 = vadd.f32 %v320_v19, %v319_v18 }
 0x195   :  { %v322_v21 = vmul.f32 0.125, %v321_v20 }
 0x197   :  { %v324_v22 = vadd.f32 1e-05, %v322_v21 }
 0x199   :  { %581 = vrsqrt.f32 %v324_v22  ;;  %vm331_vm4 = vweird.f32 %v324_v22 }
 0x19f   :  { %v582_v23 = vpop.eup %581 }
 0x1a0   :  { %v326_v24 = vmul.f32 %v582_v23, %v324_v22  ;;  %vm332_vm3 = vweird.f32 %v582_v23 }
 0x1a1   :  { %vm333_vm5 = vmor %vm331_vm4, %vm332_vm3 }
 0x1a2   :  { %v327_v25 = vmul.f32 %v582_v23, %v326_v24 }
 0x1a4   :  { %v328_v26 = vmul.f32 0.5, %v327_v25 }
 0x1a6   :  { %v329_v27 = vsub.f32 1.5, %v328_v26 }
 0x1a8   :  { %v330_v29 = vmul.f32 %v582_v23, %v329_v27 }
 0x1aa   :  { %v334_v30 = vsel %vm333_vm5, %v582_v23, %v330_v29 }
 0x1ab   :  { %v335_v31 = vmul.f32 %v334_v30, %v323_v28 }
 0x1ad   :  { %v337_v33 = vmul.f32 %v335_v31, %v313_v12  ;;  %v340_v34 = vperm.slane %v335_v31, 0 }
 0x1af   :  { %v338_v35 = vsub.f32 %v336_v32, %v337_v33  ;;  %v342_v36 = vmul.f32 %v340_v34, %v306_v3 }
 0x1b1   :  { %v344_v37 = vperm.slane %v338_v35, 0 }
 0x1b3   :  { %v346_v38 = vadd.f32 %v344_v37, %v342_v36 }
 0x1b5   :  { %v347_v39 = vpack.c.bf16 %v346_v38, %v346_v38 }
 0x1b7   :  { %424 = vmatmul.bf16.vlgmr.msra.gmra.mxu2 %v347_v39 }
 0x23a   :  { %v425_v41 = vpop.f32.mrf.mxu2 }
 0x23b   :  { %v426_v42 = vadd.f32 %v578_v40, %v425_v41 }
 0x23d   :  { %429 = vst [vmem:[#allocation10] sm:$0xff] %v426_v42 }
 0x23e   :  { %440 = dma.vmem_to_hbm [thread:$0]  %s436_s26, 128, %s438_s29, [#allocation4]  }
 0x242   :  { %v427_v43 = vpop.f32.mrf.mxu2 }
 0x243   :  { %709 = dma.done.wait [#allocation4], 128  }
 0x244   :  { %710 = vsyncadd [#allocation4], 4294967168 }
 0x245   :  { %445 = vsyncpa [#allocation3], 1 }
 0x246   :  { %446 = vsyncpa [#allocation6], 1 }
 0x247   :  { %447 = vsyncpa [#allocation9], 1 }
 0x248   :  { %448 = vsyncpa [#allocation4], 1 }

</bundles_post_ra>
